<compile_context>
chip_gen: v5e
topology: v5e:2x2
jax: 0.10.0
libtpu: 0.0.40
codegen_flags: <defaults>
</compile_context>

<pallas_src>
import functools

import jax
import jax.numpy as jnp
from jax.experimental import pallas as pl
from jax.experimental.pallas import tpu as pltpu


def _mutan_kernel(q_ref, v_ref, wq_ref, bq_ref, wv_ref, bv_ref, o_ref, acc_ref,
                  *, num_layers, o_pad, regions, region_chunk):
    """One grid step = one batch tile; all L layers fused into one matmul/path.

    q_ref:   (tb, D)        bf16  question embeddings
    v_ref:   (R, tb, D)     bf16  image embeddings, regions leading (contiguous slabs)
    wq_ref:  (D, L*o_pad)   bf16  stacked (lane-padded) question Linear weights
    bq_ref:  (1, L*o_pad)   f32   stacked question biases
    wv_ref:  (D, L*o_pad)   bf16  stacked (lane-padded) image Linear weights
    bv_ref:  (1, L*o_pad)   f32   stacked image biases
    o_ref:   (tb, o_pad)    f32   lane-dense padded output
    acc_ref: (tb, L*o_pad)  f32   scratch: running sum over regions of tanh(img@Wv+bv)
    """
    tb, d = q_ref.shape

    # ---- question path: one MXU matmul covering all L layers ---------------
    hq = jnp.tanh(
        jnp.dot(q_ref[...], wq_ref[...], preferred_element_type=jnp.float32)
        + bq_ref[...])                                            # (tb, C) f32

    # ---- image path: region-chunked matmul + tanh, f32 accumulator ---------
    # The (tb*R, C) f32 intermediate of the naive version is never built;
    # each chunk is (cr*tb, C) and is folded into acc_ref immediately.
    wv = wv_ref[...]
    bv = bv_ref[...]
    for idx, r0 in enumerate(range(0, regions, region_chunk)):
        cr = min(region_chunk, regions - r0)
        # (cr, tb, D) slab -> (cr*tb, D); tb % 8 == 0 so this is layout-preserving.
        rows = v_ref[pl.ds(r0, cr)].reshape(cr * tb, d)
        hv = jnp.tanh(
            jnp.dot(rows, wv, preferred_element_type=jnp.float32) + bv)  # (cr*tb, C)
        part = hv[:tb, :]
        for j in range(1, cr):                       # sublane-aligned slices (tb % 8 == 0)
            part = part + hv[j * tb:(j + 1) * tb, :]
        if idx == 0:
            acc_ref[...] = part
        else:
            acc_ref[...] = acc_ref[...] + part

    # mean over regions commutes with the hq broadcast multiply -> exact.
    h = hq * (acc_ref[...] * jnp.float32(1.0 / regions))         # (tb, C)

    # ---- sum over L layers: each layer is an aligned o_pad lane group ------
    s = h[:, :o_pad]
    for l in range(1, num_layers):
        s = s + h[:, l * o_pad:(l + 1) * o_pad]

    o_ref[...] = jnp.tanh(s).astype(o_ref.dtype)


def _region_chunk(tb, regions):
    """Regions per inner matmul so that chunk*tb >= ~256 MXU rows (capped at R)."""
    return max(1, min(regions, -(-256 // tb)))


def _vmem_budget_bytes():
    """Generation-aware VMEM budget with headroom (v7x 64 MiB vs v5e/v6e 128 MiB)."""
    cap = 64 * 1024 * 1024                       # conservative default: v7x per-TC
    try:
        cap = int(getattr(pltpu.get_tpu_info(), "vmem_capacity_bytes", cap))
    except Exception:
        pass
    return max(32 * 1024 * 1024, min(int(cap * 0.70), 100 * 1024 * 1024))


def _pick_tb(batch, regions, d, c, o_pad, budget):
    """Largest 8-aligned batch tile whose estimated VMEM working set fits `budget`."""
    b8 = -(-batch // 8) * 8                      # batch padded up to a multiple of 8
    top = min(b8, 512)                           # >512 rows gives marginal return
    cands = [top] + [x for x in (256, 128, 64, 32, 16, 8) if x < top]

    def usage(tb):
        cr = _region_chunk(tb, regions)
        ins = 2 * (tb * d + regions * tb * d) * 2       # double-buffered bf16 q + img tiles
        wts = 2 * d * c * 2 + 2 * c * 4                 # single-buffered weights + biases
        outs = 2 * tb * o_pad * 4                       # double-buffered f32 output tile
        work = (2 * tb * c + cr * tb * c) * 4           # acc scratch + hq + chunk hv (f32)
        return ins + wts + outs + work

    for tb in cands:
        if usage(tb) <= budget:
            return tb
    return 8


def mutan_fusion(ques_emb, img_emb, wq, bq, wv, bv):
    """ques_emb (B,D), img_emb (B,R,D), wq/wv (L,D,O), bq/bv (L,O) -> (B,O) f32."""
    B, D = ques_emb.shape
    _, R, _ = img_emb.shape
    L, _, O = wq.shape

    o_pad = O if O % 128 == 0 else pl.cdiv(O, 128) * 128     # per-layer lane width
    C = L * o_pad                                            # stacked width

    def stack(w, b):
        # (L, D, O) -> (D, L*o_pad) bf16 ; (L, O) -> (1, L*o_pad) f32
        if o_pad != O:
            w = jnp.pad(w, ((0, 0), (0, 0), (0, o_pad - O)))
            b = jnp.pad(b, ((0, 0), (0, o_pad - O)))
        w_cat = jnp.transpose(w, (1, 0, 2)).reshape(D, C).astype(jnp.bfloat16)
        b_cat = b.reshape(1, C).astype(jnp.float32)
        return w_cat, b_cat

    wq_cat, bq_cat = stack(wq, bq)
    wv_cat, bv_cat = stack(wv, bv)

    budget = _vmem_budget_bytes()
    tb = _pick_tb(B, R, D, C, o_pad, budget)
    b_pad = -(-B // tb) * tb
    cr = _region_chunk(tb, R)
    grid = (b_pad // tb,)

    q = ques_emb.astype(jnp.bfloat16)                                  # (B, D)
    v = jnp.transpose(img_emb, (1, 0, 2)).astype(jnp.bfloat16)         # (R, B, D)
    if b_pad != B:
        q = jnp.pad(q, ((0, b_pad - B), (0, 0)))
        v = jnp.pad(v, ((0, 0), (0, b_pad - B), (0, 0)))

    kernel = functools.partial(_mutan_kernel, num_layers=L, o_pad=o_pad,
                               regions=R, region_chunk=cr)

    def run(single_buffer_weights):
        # Resident operands (constant index_map) get a single VMEM buffer.
        wkw = ({"pipeline_mode": pl.Buffered(1)} if single_buffer_weights else {})
        return pl.pallas_call(
            kernel,
            out_shape=jax.ShapeDtypeStruct((b_pad, o_pad), jnp.float32),
            grid_spec=pltpu.PrefetchScalarGridSpec(
                num_scalar_prefetch=0,
                grid=grid,
                in_specs=[
                    pl.BlockSpec((tb, D), lambda i: (i, 0)),            # ques tile
                    pl.BlockSpec((R, tb, D), lambda i: (0, i, 0)),      # img tile, regions leading
                    pl.BlockSpec((D, C), lambda i: (0, 0), **wkw),      # Wq stacked (resident)
                    pl.BlockSpec((1, C), lambda i: (0, 0), **wkw),      # bq stacked (resident)
                    pl.BlockSpec((D, C), lambda i: (0, 0), **wkw),      # Wv stacked (resident)
                    pl.BlockSpec((1, C), lambda i: (0, 0), **wkw),      # bv stacked (resident)
                ],
                out_specs=pl.BlockSpec((tb, o_pad), lambda i: (i, 0)),  # lane-dense store
                scratch_shapes=[pltpu.VMEM((tb, C), jnp.float32)],      # region-sum accumulator
            ),
            compiler_params=pltpu.CompilerParams(
                # TODO(synk): pltpu.CORE_PARALLEL on v7x (2 TCs) once >=2 tiles guaranteed.
                dimension_semantics=("parallel",),
                vmem_limit_bytes=budget),
        )(q, v, wq_cat, bq_cat, wv_cat, bv_cat)

    try:
        out = run(single_buffer_weights=True)
    except Exception:
        # Fallback if this JAX build rejects pl.Buffered(1) single-buffering.
        out = run(single_buffer_weights=False)

    if b_pad != B or o_pad != O:       # skip the extra HBM pass when nothing was padded
        out = out[:B, :O]
    return out


def mutan_fusion_ref(ques_emb, img_emb, wq, bq, wv, bv):
    """Pure-JAX f32 reference matching the PyTorch forward (dropout = identity)."""
    L = wq.shape[0]
    acc = 0.0
    for i in range(L):
        x_hq = jnp.tanh(ques_emb @ wq[i] + bq[i])          # (B, O)
        x_hv = jnp.tanh(img_emb @ wv[i] + bv[i])           # (B, R, O)
        acc = acc + x_hq[:, None, :] * x_hv                # stack + sum over layers
    return jnp.tanh(jnp.mean(acc, axis=1))                 # mean over regions, tanh


def mutan_fusion_ref_bf16(ques_emb, img_emb, wq, bq, wv, bv):
    """Reference with the same bf16 matmul operands / f32 accumulation as the kernel."""
    B, R, D = img_emb.shape
    L = wq.shape[0]
    qb = ques_emb.astype(jnp.bfloat16)
    vb = img_emb.reshape(B * R, D).astype(jnp.bfloat16)
    acc = 0.0
    for i in range(L):
        x_hq = jnp.tanh(jnp.dot(qb, wq[i].astype(jnp.bfloat16),
                                preferred_element_type=jnp.float32) + bq[i])
        hv2 = jnp.dot(vb, wv[i].astype(jnp.bfloat16),
                      preferred_element_type=jnp.float32)
        x_hv = jnp.tanh(hv2.reshape(B, R, -1) + bv[i])
        acc = acc + x_hq[:, None, :] * x_hv
    return jnp.tanh(jnp.mean(acc, axis=1))


if __name__ == "__main__":
    B, R, D, O, L = 2, 8, 32, 32, 3   # batch, regions, input_dim, out_dim, num_layers

    key = jax.random.PRNGKey(0)
    ks = jax.random.split(key, 6)
    ques_emb = jax.random.normal(ks[0], (B, D), jnp.float32)
    img_emb = jax.random.normal(ks[1], (B, R, D), jnp.float32)
    # Deterministic synthetic parameters (nn.Linear(input_dim, out_dim) x L, twice).
    wq = jax.random.normal(ks[2], (L, D, O), jnp.float32) / jnp.sqrt(jnp.float32(D))
    bq = jax.random.normal(ks[3], (L, O), jnp.float32) * 0.01
    wv = jax.random.normal(ks[4], (L, D, O), jnp.float32) / jnp.sqrt(jnp.float32(D))
    bv = jax.random.normal(ks[5], (L, O), jnp.float32) * 0.01

    out = mutan_fusion(ques_emb, img_emb, wq, bq, wv, bv)
    jax.block_until_ready(out)
    assert out.shape == (B, O), out.shape

    # Tight check against a reference using the same bf16 operands (kernel math).
    ref_bf = mutan_fusion_ref_bf16(ques_emb, img_emb, wq, bq, wv, bv)
    assert jnp.allclose(out, ref_bf, atol=2e-3, rtol=2e-3), \
        float(jnp.max(jnp.abs(out - ref_bf)))

    # Loose check against the exact f32 PyTorch-semantics reference
    # (deviation is bounded bf16 quantization of the MXU operands).
    ref32 = mutan_fusion_ref(ques_emb, img_emb, wq, bq, wv, bv)
    assert jnp.allclose(out, ref32, atol=5e-2, rtol=5e-2), \
        float(jnp.max(jnp.abs(out - ref32)))

    print("KERNEL_OK")
</pallas_src>

<mosaic_0001>
module attributes {stable_mosaic.version = 11 : i64} {
  func.func @_mutan_kernel(%arg0: i32, %arg1: memref<8x32xbf16, #tpu.memory_space<vmem>>, %arg2: memref<8x8x32xbf16, #tpu.memory_space<vmem>>, %arg3: memref<32x384xbf16, #tpu.memory_space<vmem>>, %arg4: memref<1x384xf32, #tpu.memory_space<vmem>>, %arg5: memref<32x384xbf16, #tpu.memory_space<vmem>>, %arg6: memref<1x384xf32, #tpu.memory_space<vmem>>, %arg7: memref<8x128xf32, #tpu.memory_space<vmem>>, %arg8: memref<8x384xf32, #tpu.memory_space<vmem>>) attributes {dimension_semantics = [#tpu.dimension_semantics<parallel>], iteration_bounds = array<i64: 1>, scalar_prefetch = 0 : i64, scratch_operands = 1 : i64, tpu.core_type = #tpu.core_type<tc>, window_params = [{transform_indices = @transform_0, window_bounds = array<i64: 8, 32>}, {transform_indices = @transform_1, window_bounds = array<i64: 8, 8, 32>}, {pipeline_mode = #tpu.pipeline_mode<synchronous>, transform_indices = @transform_2, window_bounds = array<i64: 32, 384>}, {pipeline_mode = #tpu.pipeline_mode<synchronous>, transform_indices = @transform_3, window_bounds = array<i64: 1, 384>}, {pipeline_mode = #tpu.pipeline_mode<synchronous>, transform_indices = @transform_4, window_bounds = array<i64: 32, 384>}, {pipeline_mode = #tpu.pipeline_mode<synchronous>, transform_indices = @transform_5, window_bounds = array<i64: 1, 384>}, {transform_indices = @transform_6, window_bounds = array<i64: 8, 128>}]} {
    %c0 = arith.constant 0 : index
    %c0_0 = arith.constant 0 : index
    %0 = vector.load %arg1[%c0, %c0_0] : memref<8x32xbf16, #tpu.memory_space<vmem>>, vector<8x32xbf16>
    %c0_1 = arith.constant 0 : index
    %c0_2 = arith.constant 0 : index
    %1 = vector.load %arg3[%c0_1, %c0_2] : memref<32x384xbf16, #tpu.memory_space<vmem>>, vector<32x384xbf16>
    %cst = arith.constant dense<0.000000e+00> : vector<8x384xf32>
    %2 = tpu.matmul %0, %1, %cst {dimension_numbers = #tpu.dot_dimension_numbers<[1], [0], [0], [1], [0, 0, 1, 1], [], []>} : vector<8x32xbf16>, vector<32x384xbf16>, vector<8x384xf32> -> vector<8x384xf32>
    %c0_3 = arith.constant 0 : index
    %c0_4 = arith.constant 0 : index
    %3 = vector.load %arg4[%c0_3, %c0_4] : memref<1x384xf32, #tpu.memory_space<vmem>>, vector<1x384xf32>
    %4 = vector.broadcast %3 : vector<1x384xf32> to vector<8x384xf32>
    %5 = arith.addf %2, %4 : vector<8x384xf32>
    %6 = math.tanh %5 : vector<8x384xf32>
    %c0_5 = arith.constant 0 : index
    %c0_6 = arith.constant 0 : index
    %7 = vector.load %arg5[%c0_5, %c0_6] : memref<32x384xbf16, #tpu.memory_space<vmem>>, vector<32x384xbf16>
    %c0_7 = arith.constant 0 : index
    %c0_8 = arith.constant 0 : index
    %8 = vector.load %arg6[%c0_7, %c0_8] : memref<1x384xf32, #tpu.memory_space<vmem>>, vector<1x384xf32>
    %c0_9 = arith.constant 0 : index
    %c0_10 = arith.constant 0 : index
    %c0_11 = arith.constant 0 : index
    %9 = vector.load %arg2[%c0_9, %c0_10, %c0_11] : memref<8x8x32xbf16, #tpu.memory_space<vmem>>, vector<8x8x32xbf16>
    %10 = vector.shape_cast %9 : vector<8x8x32xbf16> to vector<64x32xbf16>
    %cst_12 = arith.constant dense<0.000000e+00> : vector<64x384xf32>
    %11 = tpu.matmul %10, %7, %cst_12 {dimension_numbers = #tpu.dot_dimension_numbers<[1], [0], [0], [1], [0, 0, 1, 1], [], []>} : vector<64x32xbf16>, vector<32x384xbf16>, vector<64x384xf32> -> vector<64x384xf32>
    %12 = vector.broadcast %8 : vector<1x384xf32> to vector<64x384xf32>
    %13 = arith.addf %11, %12 : vector<64x384xf32>
    %14 = math.tanh %13 : vector<64x384xf32>
    %15 = vector.extract_strided_slice %14 {offsets = [0, 0], sizes = [8, 384], strides = [1, 1]} : vector<64x384xf32> to vector<8x384xf32>
    %16 = vector.extract_strided_slice %14 {offsets = [8, 0], sizes = [8, 384], strides = [1, 1]} : vector<64x384xf32> to vector<8x384xf32>
    %17 = arith.addf %15, %16 : vector<8x384xf32>
    %18 = vector.extract_strided_slice %14 {offsets = [16, 0], sizes = [8, 384], strides = [1, 1]} : vector<64x384xf32> to vector<8x384xf32>
    %19 = arith.addf %17, %18 : vector<8x384xf32>
    %20 = vector.extract_strided_slice %14 {offsets = [24, 0], sizes = [8, 384], strides = [1, 1]} : vector<64x384xf32> to vector<8x384xf32>
    %21 = arith.addf %19, %20 : vector<8x384xf32>
    %22 = vector.extract_strided_slice %14 {offsets = [32, 0], sizes = [8, 384], strides = [1, 1]} : vector<64x384xf32> to vector<8x384xf32>
    %23 = arith.addf %21, %22 : vector<8x384xf32>
    %24 = vector.extract_strided_slice %14 {offsets = [40, 0], sizes = [8, 384], strides = [1, 1]} : vector<64x384xf32> to vector<8x384xf32>
    %25 = arith.addf %23, %24 : vector<8x384xf32>
    %26 = vector.extract_strided_slice %14 {offsets = [48, 0], sizes = [8, 384], strides = [1, 1]} : vector<64x384xf32> to vector<8x384xf32>
    %27 = arith.addf %25, %26 : vector<8x384xf32>
    %28 = vector.extract_strided_slice %14 {offsets = [56, 0], sizes = [8, 384], strides = [1, 1]} : vector<64x384xf32> to vector<8x384xf32>
    %29 = arith.addf %27, %28 : vector<8x384xf32>
    %c0_13 = arith.constant 0 : index
    %c0_14 = arith.constant 0 : index
    %30 = vector.load %arg8[%c0_13, %c0_14] : memref<8x384xf32, #tpu.memory_space<vmem>>, vector<8x384xf32>
    tpu.vector_store %arg8[%c0_13, %c0_14], %29 {strides = array<i32>} : memref<8x384xf32, #tpu.memory_space<vmem>>, vector<8x384xf32>,
    %c0_15 = arith.constant 0 : index
    %c0_16 = arith.constant 0 : index
    %31 = vector.load %arg8[%c0_15, %c0_16] : memref<8x384xf32, #tpu.memory_space<vmem>>, vector<8x384xf32>
    %cst_17 = arith.constant 1.250000e-01 : f32
    %32 = vector.broadcast %cst_17 : f32 to vector<8x384xf32>
    %33 = arith.mulf %31, %32 : vector<8x384xf32>
    %34 = arith.mulf %6, %33 : vector<8x384xf32>
    %35 = vector.extract_strided_slice %34 {offsets = [0, 0], sizes = [8, 128], strides = [1, 1]} : vector<8x384xf32> to vector<8x128xf32>
    %36 = vector.extract_strided_slice %34 {offsets = [0, 128], sizes = [8, 128], strides = [1, 1]} : vector<8x384xf32> to vector<8x128xf32>
    %37 = arith.addf %35, %36 : vector<8x128xf32>
    %38 = vector.extract_strided_slice %34 {offsets = [0, 256], sizes = [8, 128], strides = [1, 1]} : vector<8x384xf32> to vector<8x128xf32>
    %39 = arith.addf %37, %38 : vector<8x128xf32>
    %40 = math.tanh %39 : vector<8x128xf32>
    %c0_18 = arith.constant 0 : index
    %c0_19 = arith.constant 0 : index
    %41 = vector.load %arg7[%c0_18, %c0_19] : memref<8x128xf32, #tpu.memory_space<vmem>>, vector<8x128xf32>
    tpu.vector_store %arg7[%c0_18, %c0_19], %40 {strides = array<i32>} : memref<8x128xf32, #tpu.memory_space<vmem>>, vector<8x128xf32>,
    return
  }
  func.func @transform_0(%arg0: i32) -> (i32, i32) {
    %c0_i32 = arith.constant 0 : i32
    %c0_i32_0 = arith.constant 0 : i32
    return %arg0, %c0_i32 : i32, i32
  }
  func.func @transform_1(%arg0: i32) -> (i32, i32, i32) {
    %c0_i32 = arith.constant 0 : i32
    %c0_i32_0 = arith.constant 0 : i32
    %c0_i32_1 = arith.constant 0 : i32
    return %c0_i32, %arg0, %c0_i32_0 : i32, i32, i32
  }
  func.func @transform_2(%arg0: i32) -> (i32, i32) {
    %c0_i32 = arith.constant 0 : i32
    %c0_i32_0 = arith.constant 0 : i32
    %c0_i32_1 = arith.constant 0 : i32
    return %c0_i32, %c0_i32_0 : i32, i32
  }
  func.func @transform_3(%arg0: i32) -> (i32, i32) {
    %c0_i32 = arith.constant 0 : i32
    %c0_i32_0 = arith.constant 0 : i32
    %c0_i32_1 = arith.constant 0 : i32
    return %c0_i32, %c0_i32_0 : i32, i32
  }
  func.func @transform_4(%arg0: i32) -> (i32, i32) {
    %c0_i32 = arith.constant 0 : i32
    %c0_i32_0 = arith.constant 0 : i32
    %c0_i32_1 = arith.constant 0 : i32
    return %c0_i32, %c0_i32_0 : i32, i32
  }
  func.func @transform_5(%arg0: i32) -> (i32, i32) {
    %c0_i32 = arith.constant 0 : i32
    %c0_i32_0 = arith.constant 0 : i32
    %c0_i32_1 = arith.constant 0 : i32
    return %c0_i32, %c0_i32_0 : i32, i32
  }
  func.func @transform_6(%arg0: i32) -> (i32, i32) {
    %c0_i32 = arith.constant 0 : i32
    %c0_i32_0 = arith.constant 0 : i32
    return %arg0, %c0_i32 : i32, i32
  }
}

module attributes {stable_mosaic.version = 11 : i64} {
  func.func @_mutan_kernel(%arg0: i32, %arg1: memref<8x32xbf16, #tpu.memory_space<vmem>>, %arg2: memref<8x8x32xbf16, #tpu.memory_space<vmem>>, %arg3: memref<32x384xbf16, #tpu.memory_space<vmem>>, %arg4: memref<1x384xf32, #tpu.memory_space<vmem>>, %arg5: memref<32x384xbf16, #tpu.memory_space<vmem>>, %arg6: memref<1x384xf32, #tpu.memory_space<vmem>>, %arg7: memref<8x128xf32, #tpu.memory_space<vmem>>, %arg8: memref<8x384xf32, #tpu.memory_space<vmem>>) attributes {dimension_semantics = [#tpu.dimension_semantics<parallel>], iteration_bounds = array<i64: 1>, scalar_prefetch = 0 : i64, scratch_operands = 1 : i64, tpu.core_type = #tpu.core_type<tc>, window_params = [{transform_indices = @transform_0, window_bounds = array<i64: 8, 32>}, {transform_indices = @transform_1, window_bounds = array<i64: 8, 8, 32>}, {pipeline_mode = #tpu.pipeline_mode<synchronous>, transform_indices = @transform_2, window_bounds = array<i64: 32, 384>}, {pipeline_mode = #tpu.pipeline_mode<synchronous>, transform_indices = @transform_3, window_bounds = array<i64: 1, 384>}, {pipeline_mode = #tpu.pipeline_mode<synchronous>, transform_indices = @transform_4, window_bounds = array<i64: 32, 384>}, {pipeline_mode = #tpu.pipeline_mode<synchronous>, transform_indices = @transform_5, window_bounds = array<i64: 1, 384>}, {transform_indices = @transform_6, window_bounds = array<i64: 8, 128>}]} {
    %c0 = arith.constant 0 : index
    %c0_0 = arith.constant 0 : index
    %0 = vector.load %arg1[%c0, %c0_0] : memref<8x32xbf16, #tpu.memory_space<vmem>>, vector<8x32xbf16>
    %c0_1 = arith.constant 0 : index
    %c0_2 = arith.constant 0 : index
    %1 = vector.load %arg3[%c0_1, %c0_2] : memref<32x384xbf16, #tpu.memory_space<vmem>>, vector<32x384xbf16>
    %cst = arith.constant dense<0.000000e+00> : vector<8x384xf32>
    %2 = tpu.matmul %0, %1, %cst {dimension_numbers = #tpu.dot_dimension_numbers<[1], [0], [0], [1], [0, 0, 1, 1], [], []>} : vector<8x32xbf16>, vector<32x384xbf16>, vector<8x384xf32> -> vector<8x384xf32>
    %c0_3 = arith.constant 0 : index
    %c0_4 = arith.constant 0 : index
    %3 = vector.load %arg4[%c0_3, %c0_4] : memref<1x384xf32, #tpu.memory_space<vmem>>, vector<1x384xf32>
    %4 = vector.broadcast %3 : vector<1x384xf32> to vector<8x384xf32>
    %5 = arith.addf %2, %4 : vector<8x384xf32>
    %6 = math.tanh %5 : vector<8x384xf32>
    %c0_5 = arith.constant 0 : index
    %c0_6 = arith.constant 0 : index
    %7 = vector.load %arg5[%c0_5, %c0_6] : memref<32x384xbf16, #tpu.memory_space<vmem>>, vector<32x384xbf16>
    %c0_7 = arith.constant 0 : index
    %c0_8 = arith.constant 0 : index
    %8 = vector.load %arg6[%c0_7, %c0_8] : memref<1x384xf32, #tpu.memory_space<vmem>>, vector<1x384xf32>
    %c0_9 = arith.constant 0 : index
    %c0_10 = arith.constant 0 : index
    %c0_11 = arith.constant 0 : index
    %9 = vector.load %arg2[%c0_9, %c0_10, %c0_11] : memref<8x8x32xbf16, #tpu.memory_space<vmem>>, vector<8x8x32xbf16>
    %10 = vector.shape_cast %9 : vector<8x8x32xbf16> to vector<64x32xbf16>
    %cst_12 = arith.constant dense<0.000000e+00> : vector<64x384xf32>
    %11 = tpu.matmul %10, %7, %cst_12 {dimension_numbers = #tpu.dot_dimension_numbers<[1], [0], [0], [1], [0, 0, 1, 1], [], []>} : vector<64x32xbf16>, vector<32x384xbf16>, vector<64x384xf32> -> vector<64x384xf32>
    %12 = vector.broadcast %8 : vector<1x384xf32> to vector<64x384xf32>
    %13 = arith.addf %11, %12 : vector<64x384xf32>
    %14 = math.tanh %13 : vector<64x384xf32>
    %15 = vector.extract_strided_slice %14 {offsets = [0, 0], sizes = [8, 384], strides = [1, 1]} : vector<64x384xf32> to vector<8x384xf32>
    %16 = vector.extract_strided_slice %14 {offsets = [8, 0], sizes = [8, 384], strides = [1, 1]} : vector<64x384xf32> to vector<8x384xf32>
    %17 = arith.addf %15, %16 : vector<8x384xf32>
    %18 = vector.extract_strided_slice %14 {offsets = [16, 0], sizes = [8, 384], strides = [1, 1]} : vector<64x384xf32> to vector<8x384xf32>
    %19 = arith.addf %17, %18 : vector<8x384xf32>
    %20 = vector.extract_strided_slice %14 {offsets = [24, 0], sizes = [8, 384], strides = [1, 1]} : vector<64x384xf32> to vector<8x384xf32>
    %21 = arith.addf %19, %20 : vector<8x384xf32>
    %22 = vector.extract_strided_slice %14 {offsets = [32, 0], sizes = [8, 384], strides = [1, 1]} : vector<64x384xf32> to vector<8x384xf32>
    %23 = arith.addf %21, %22 : vector<8x384xf32>
    %24 = vector.extract_strided_slice %14 {offsets = [40, 0], sizes = [8, 384], strides = [1, 1]} : vector<64x384xf32> to vector<8x384xf32>
    %25 = arith.addf %23, %24 : vector<8x384xf32>
    %26 = vector.extract_strided_slice %14 {offsets = [48, 0], sizes = [8, 384], strides = [1, 1]} : vector<64x384xf32> to vector<8x384xf32>
    %27 = arith.addf %25, %26 : vector<8x384xf32>
    %28 = vector.extract_strided_slice %14 {offsets = [56, 0], sizes = [8, 384], strides = [1, 1]} : vector<64x384xf32> to vector<8x384xf32>
    %29 = arith.addf %27, %28 : vector<8x384xf32>
    %c0_13 = arith.constant 0 : index
    %c0_14 = arith.constant 0 : index
    %30 = vector.load %arg8[%c0_13, %c0_14] : memref<8x384xf32, #tpu.memory_space<vmem>>, vector<8x384xf32>
    tpu.vector_store %arg8[%c0_13, %c0_14], %29 {strides = array<i32>} : memref<8x384xf32, #tpu.memory_space<vmem>>, vector<8x384xf32>,
    %c0_15 = arith.constant 0 : index
    %c0_16 = arith.constant 0 : index
    %31 = vector.load %arg8[%c0_15, %c0_16] : memref<8x384xf32, #tpu.memory_space<vmem>>, vector<8x384xf32>
    %cst_17 = arith.constant 1.250000e-01 : f32
    %32 = vector.broadcast %cst_17 : f32 to vector<8x384xf32>
    %33 = arith.mulf %31, %32 : vector<8x384xf32>
    %34 = arith.mulf %6, %33 : vector<8x384xf32>
    %35 = vector.extract_strided_slice %34 {offsets = [0, 0], sizes = [8, 128], strides = [1, 1]} : vector<8x384xf32> to vector<8x128xf32>
    %36 = vector.extract_strided_slice %34 {offsets = [0, 128], sizes = [8, 128], strides = [1, 1]} : vector<8x384xf32> to vector<8x128xf32>
    %37 = arith.addf %35, %36 : vector<8x128xf32>
    %38 = vector.extract_strided_slice %34 {offsets = [0, 256], sizes = [8, 128], strides = [1, 1]} : vector<8x384xf32> to vector<8x128xf32>
    %39 = arith.addf %37, %38 : vector<8x128xf32>
    %40 = math.tanh %39 : vector<8x128xf32>
    %c0_18 = arith.constant 0 : index
    %c0_19 = arith.constant 0 : index
    %41 = vector.load %arg7[%c0_18, %c0_19] : memref<8x128xf32, #tpu.memory_space<vmem>>, vector<8x128xf32>
    tpu.vector_store %arg7[%c0_18, %c0_19], %40 {strides = array<i32>} : memref<8x128xf32, #tpu.memory_space<vmem>>, vector<8x128xf32>,
    return
  }
  func.func @transform_0(%arg0: i32) -> (i32, i32) {
    %c0_i32 = arith.constant 0 : i32
    %c0_i32_0 = arith.constant 0 : i32
    return %arg0, %c0_i32 : i32, i32
  }
  func.func @transform_1(%arg0: i32) -> (i32, i32, i32) {
    %c0_i32 = arith.constant 0 : i32
    %c0_i32_0 = arith.constant 0 : i32
    %c0_i32_1 = arith.constant 0 : i32
    return %c0_i32, %arg0, %c0_i32_0 : i32, i32, i32
  }
  func.func @transform_2(%arg0: i32) -> (i32, i32) {
    %c0_i32 = arith.constant 0 : i32
    %c0_i32_0 = arith.constant 0 : i32
    %c0_i32_1 = arith.constant 0 : i32
    return %c0_i32, %c0_i32_0 : i32, i32
  }
  func.func @transform_3(%arg0: i32) -> (i32, i32) {
    %c0_i32 = arith.constant 0 : i32
    %c0_i32_0 = arith.constant 0 : i32
    %c0_i32_1 = arith.constant 0 : i32
    return %c0_i32, %c0_i32_0 : i32, i32
  }
  func.func @transform_4(%arg0: i32) -> (i32, i32) {
    %c0_i32 = arith.constant 0 : i32
    %c0_i32_0 = arith.constant 0 : i32
    %c0_i32_1 = arith.constant 0 : i32
    return %c0_i32, %c0_i32_0 : i32, i32
  }
  func.func @transform_5(%arg0: i32) -> (i32, i32) {
    %c0_i32 = arith.constant 0 : i32
    %c0_i32_0 = arith.constant 0 : i32
    %c0_i32_1 = arith.constant 0 : i32
    return %c0_i32, %c0_i32_0 : i32, i32
  }
  func.func @transform_6(%arg0: i32) -> (i32, i32) {
    %c0_i32 = arith.constant 0 : i32
    %c0_i32_0 = arith.constant 0 : i32
    return %arg0, %c0_i32 : i32, i32
  }
}

</mosaic_0001>

<bundles_post_ra>
// kernel: tpu_custom_call.1
= control target key start
LH: loop header
LB: loop body
LE: loop exit
PB: predicated region body
PF: predicated region fallthrough
CT: control target
= control target key end

     0   :  { %11 = vsyncpa [#allocation4], 0  ;;  %s882_s0 = inlined_call_operand.hbm [shape: bf16[8,32], index: 0, kind: input, shape index: {}]   ;;  %s883_s1 = inlined_call_operand.hbm [shape: bf16[8,8,32], index: 1, kind: input, shape index: {}]   ;;  %s884_s2 = inlined_call_operand.hbm [shape: bf16[32,384], index: 2, kind: input, shape index: {}]   ;;  %s885_s3 = inlined_call_operand.hbm [shape: f32[1,384], index: 3, kind: input, shape index: {}]   ;;  %s886_s4 = inlined_call_operand.hbm [shape: bf16[32,384], index: 4, kind: input, shape index: {}]   ;;  %s887_s5 = inlined_call_operand.vmem [shape: f32[1,384], index: 5, kind: input, shape index: {}]   ;;  %s888_s6 = inlined_call_operand.hbm [shape: f32[8,128], index: 6, kind: output, shape index: {}]  }
   0x1   :  { %12 = vsyncpa [#allocation7], 0 }
   0x2   :  { %13 = vsyncpa [#allocation10], 0  ;;  %s30_s23 = sshll.u32 %s883_s1, 4  ;;  %s31_s23 = int_to_ptr.hbm [resolvable:$true] %s30_s23 }
   0x3   :  { %14 = vsyncpa [#allocation5], 0  ;;  %s762_s24 = smov [#allocation6]   ;;  %s57_s28 = sshll.u32 %s885_s3, 4  ;;  %s58_s28 = int_to_ptr.hbm [resolvable:$true] %s57_s28 }
   0x4   :  { %s32_s25 = sshll.u32 %s762_s24, 4  ;;  %s763_s29 = smov 64   ;;  %s33_s25 = int_to_ptr.vmem [resolvable:$true] %s32_s25 }
   0x5   :  { %s764_s30 = smov 4   ;;  %s765_s7 = smov [#allocation9]  }
   0x6   :  { %38 = dma.hbm_to_vmem [thread:$0]  %s31_s23, 512, %s33_s25, [#allocation7], %s763_s29, %s763_s29, %s764_s30  }
   0x7   :  { %s59_s8 = sshll.u32 %s765_s7, 4  ;;  %s20_s11 = sshll.u32 %s882_s0, 4  ;;  %s60_s8 = int_to_ptr.vmem [resolvable:$true] %s59_s8  ;;  %s21_s11 = int_to_ptr.hbm [resolvable:$true] %s20_s11 }
   0x8   :  { %62 = dma.hbm_to_vmem [thread:$0]  %s58_s28, 48, %s60_s8, [#allocation10]  }
   0x9   :  { %s43_s13 = sshll.u32 %s884_s2, 4  ;;  %s766_s14 = smov [#allocation3]   ;;  %s44_s13 = int_to_ptr.hbm [resolvable:$true] %s43_s13 }
   0xa   :  { %s22_s15 = sshll.u32 %s766_s14, 4  ;;  %s767_s3 = smov [#allocation8]   ;;  %s23_s15 = int_to_ptr.vmem [resolvable:$true] %s22_s15 }
   0xb   :  { %25 = dma.hbm_to_vmem [thread:$0]  %s21_s11, 64, %s23_s15, [#allocation4]  }
   0xc   :  { %s45_s16 = sshll.u32 %s767_s3, 4  ;;  %s768_s17 = smov 192   ;;  %s46_s16 = int_to_ptr.vmem [resolvable:$true] %s45_s16 }
   0xd   :  { %s769_s18 = smov 12   ;;  %s67_s20 = sshll.u32 %s886_s4, 4  ;;  %s68_s20 = int_to_ptr.hbm [resolvable:$true] %s67_s20 }
   0xe   :  { %51 = dma.hbm_to_vmem [thread:$0]  %s44_s13, 768, %s46_s16, [#allocation7], %s768_s17, %s768_s17, %s769_s18  }
   0xf   :  { %s770_s21 = smov [#allocation11]  }
  0x10   :  { %s69_s22 = sshll.u32 %s770_s21, 4  ;;  %s70_s22 = int_to_ptr.vmem [resolvable:$true] %s69_s22 }
  0x11   :  { %75 = dma.hbm_to_vmem [thread:$0]  %s68_s20, 768, %s70_s22, [#allocation10], %s768_s17, %s768_s17, %s769_s18  }
  0x12   :  { %754 = dma.done.wait [#allocation4], 64  }
  0x13   :  { %755 = vsyncadd [#allocation4], 4294967232 }
  0x14   :  { %756 = dma.done.wait [#allocation7], 1280  }
  0x15   :  { %757 = vsyncadd [#allocation7], 4294966016 }
  0x16   :  { %758 = dma.done.wait [#allocation10], 816  }
  0x17   :  { %759 = vsyncadd [#allocation10], 4294966480  ;;  %v506_v0 = vld [vmem:[#allocation11 + $0x18] sm:$0xf]  ;;  %v538_v1 = vld [vmem:[#allocation11 + $0x20] sm:$0xf0] }
  0x18   :  { %v537_v2 = vld [vmem:[#allocation11 + $0x1c] sm:$0xf]  ;;  %v507_v3 = vor.u32 %v538_v1, %v506_v0  ;;  %v508_v4 = vld [vmem:[#allocation11 + $0x24] sm:$0xf0]  ;;  %v514_v5 = vld [vmem:[#allocation11 + $0x20] sm:$0xf] }
  0x19   :  { %v539_v6 = vld [vmem:[#allocation11 + $0x28] sm:$0xf0]  ;;  %v511_v7 = vor.u32 %v537_v2, %v508_v4  ;;  %v494_v9 = vld [vmem:[#allocation11] sm:$0xf]  ;;  %v534_v11 = vld [vmem:[#allocation11 + $0x4] sm:$0xf] }
  0x1a   :  { %v515_v8 = vor.u32 %v539_v6, %v514_v5  ;;  %v535_v10 = vld [vmem:[#allocation11 + $0x8] sm:$0xf0]  ;;  %288 = vmatpush.bf16.msra.mxu3 %v507_v3  ;;  %v496_v13 = vld [vmem:[#allocation11 + $0xc] sm:$0xf0]  ;;  %v502_v14 = vld [vmem:[#allocation11 + $0x8] sm:$0xf] }
  0x1b   :  { %v495_v12 = vor.u32 %v535_v10, %v494_v9  ;;  %v536_v15 = vld [vmem:[#allocation11 + $0x10] sm:$0xf0]  ;;  %317 = vmatpush.bf16.msra.mxu0 %v511_v7  ;;  %v499_v16 = vor.u32 %v534_v11, %v496_v13  ;;  %v463_v18 = vld [vmem:[#allocation8 + $0x18] sm:$0xf]  ;;  %v532_v19 = vld [vmem:[#allocation8 + $0x20] sm:$0xf0] }
  0x1c   :  { %346 = vmatpush.bf16.msra.mxu1 %v515_v8  ;;  %v503_v17 = vor.u32 %v536_v15, %v502_v14  ;;  %v464_v20 = vor.u32 %v532_v19, %v463_v18  ;;  %v451_v21 = vld [vmem:[#allocation8] sm:$0xf]  ;;  %v529_v22 = vld [vmem:[#allocation8 + $0x8] sm:$0xf0]  ;;  %v531_v24 = vld [vmem:[#allocation8 + $0x1c] sm:$0xf] }
  0x1d   :  { %v540_v23 = vld [vmem:[#allocation6] sm:$0xff]  ;;  %v465_v25 = vld [vmem:[#allocation8 + $0x24] sm:$0xf0]  ;;  %vm148_vm0 = vcmask 261120   ;;  %v452_v26 = vor.u32 %v529_v22, %v451_v21  ;;  %v453_v29 = vld [vmem:[#allocation8 + $0xc] sm:$0xf0] }
  0x1e   :  { %289 = vmatpush.bf16.msra.mxu3 %v495_v12  ;;  %158 = vmatpush.bf16.msra.mxu2 %v464_v20  ;;  %v468_v27 = vor.u32 %v531_v24, %v465_v25  ;;  %v528_v28 = vld [vmem:[#allocation8 + $0x4] sm:$0xf]  ;;  %v471_v30 = vld [vmem:[#allocation8 + $0x20] sm:$0xf]  ;;  %v99_v31 = vld [vmem:[#allocation3] sm:$0xf] }
  0x1f   :  { %318 = vmatpush.bf16.msra.mxu0 %v499_v16  ;;  %v533_v32 = vld [vmem:[#allocation8 + $0x28] sm:$0xf0]  ;;  %v456_v33 = vor.u32 %v528_v28, %v453_v29  ;;  %v459_v36 = vld [vmem:[#allocation8 + $0x8] sm:$0xf]  ;;  %v530_v37 = vld [vmem:[#allocation8 + $0x10] sm:$0xf0] }
  0x20   :  { %347 = vmatpush.bf16.msra.mxu1 %v503_v17  ;;  %v472_v34 = vor.u32 %v533_v32, %v471_v30  ;;  %v541_v35 = vld [vmem:[#allocation6 + $0x8] sm:$0xff]  ;;  %v460_v38 = vor.u32 %v530_v37, %v459_v36  ;;  %v542_v39 = vld [vmem:[#allocation6 + $0x10] sm:$0xff]  ;;  %v543_v40 = vld [vmem:[#allocation6 + $0x18] sm:$0xff]  ;;  %s437_s26 = sshll.u32 %s888_s6, 4  ;;  %s438_s26 = int_to_ptr.hbm [resolvable:$true] %s437_s26 }
  0x21   :  { %516 = vmatmul.msk.bf16.vlgmr.msra.gmra.mxu3 %vm148_vm0, %v540_v23  ;;  %v202_v55 = vld [vmem:[%s887_s5] sm:$0x7]  ;;  %s771_s5 = smov [#allocation12]  }
  0x22   :  { %520 = vmatmul.msk.bf16.vlgmr.msra.gmra.mxu0 %vm148_vm0, %v540_v23  ;;  %159 = vmatpush.bf16.msra.mxu2 %v452_v26  ;;  %v844_v57 = vperm.slane %v202_v55, 1  ;;  %v846_v58 = vperm.slane %v202_v55, 2  ;;  %v848_v59 = vperm.slane %v202_v55, 0  ;;  %s435_s23 = sshll.u32 %s771_s5, 4  ;;  %s436_s23 = int_to_ptr.vmem [resolvable:$true] %s435_s23 }
  0x23   :  { %524 = vmatmul.msk.bf16.vlgmr.msra.gmra.mxu1 %vm148_vm0, %v540_v23 }
  0x25   :  { %473 = vmatmul.msk.bf16.vlgmr.msra.gmra.mxu2 %vm148_vm0, %v99_v31 }
  0x26   :  { %171 = vmatpush.bf16.msrb.mxu2 %v468_v27 }
  0x2a   :  { %172 = vmatpush.bf16.msrb.mxu2 %v456_v33 }
  0x2e   :  { %184 = vmatpush.bf16.msra.mxu2 %v472_v34 }
  0x31   :  { %517 = vmatmul.msk.bf16.gmra.mxu3 %vm148_vm0, %v541_v35 }
  0x32   :  { %521 = vmatmul.msk.bf16.gmra.mxu0 %vm148_vm0, %v541_v35  ;;  %185 = vmatpush.bf16.msra.mxu2 %v460_v38 }
  0x33   :  { %525 = vmatmul.msk.bf16.gmra.mxu1 %vm148_vm0, %v541_v35 }
  0x35   :  { %474 = vmatmul.msk.bf16.vlgmr.msrb.gmra.mxu2 %vm148_vm0, %v99_v31 }
  0x41   :  { %518 = vmatmul.msk.bf16.gmra.mxu3 %vm148_vm0, %v542_v39 }
  0x42   :  { %522 = vmatmul.msk.bf16.gmra.mxu0 %vm148_vm0, %v542_v39 }
  0x43   :  { %526 = vmatmul.msk.bf16.gmra.mxu1 %vm148_vm0, %v542_v39 }
  0x45   :  { %475 = vmatmul.msk.bf16.vlgmr.msra.gmra.mxu2 %vm148_vm0, %v99_v31 }
  0x51   :  { %519 = vmatmul.msk.bf16.gmra.mxu3 %vm148_vm0, %v543_v40 }
  0x52   :  { %523 = vmatmul.msk.bf16.gmra.mxu0 %vm148_vm0, %v543_v40 }
  0x53   :  { %527 = vmatmul.msk.bf16.gmra.mxu1 %vm148_vm0, %v543_v40 }
  0x9f   :  { %v320_v41 = vpop.f32.mrf.mxu0 }
  0xa0   :  { %v349_v42 = vpop.f32.mrf.mxu1  ;;  %v321_v62 = vadd.f32 %v320_v41, %v844_v57 }
  0xa1   :  { %v350_v0 = vadd.f32 %v349_v42, %v846_v58  ;;  %v108_v42 = vld [vmem:[#allocation9] sm:$0x7] }
  0xa2   :  { %554 = vtanh.f32 %v321_v62  ;;  %v111_v55 = vperm.slane %v108_v42, 1 }
  0xa3   :  { %556 = vtanh.f32 %v350_v0  ;;  %v112_v0 = vperm.slane %v108_v42, 2 }
  0xa4   :  { %v291_v43 = vpop.f32.mrf.mxu3 }
  0xa5   :  { %v292_v1 = vadd.f32 %v291_v43, %v848_v59 }
  0xa7   :  { %v322_v44 = vpop.f32.mrf.mxu0  ;;  %558 = vtanh.f32 %v292_v1 }
  0xa8   :  { %v351_v45 = vpop.f32.mrf.mxu1  ;;  %v837_v46 = vpop.f32.mrf.mxu2  ;;  %v323_v2 = vadd.f32 %v322_v44, %v844_v57 }
  0xa9   :  { %v352_v4 = vadd.f32 %v351_v45, %v846_v58  ;;  %v555_v13 = vpop.eup %554 }
  0xaa   :  { %560 = vtanh.f32 %v323_v2  ;;  %v557_v15 = vpop.eup %556 }
  0xab   :  { %562 = vtanh.f32 %v352_v4 }
  0xac   :  { %v293_v47 = vpop.f32.mrf.mxu3 }
  0xad   :  { %v294_v5 = vadd.f32 %v293_v47, %v848_v59  ;;  %v559_v18 = vpop.eup %558 }
  0xaf   :  { %v325_v48 = vpop.f32.mrf.mxu0  ;;  %564 = vtanh.f32 %v294_v5 }
  0xb0   :  { %v354_v49 = vpop.f32.mrf.mxu1  ;;  %v163_v50 = vpop.f32.mrf.mxu2  ;;  %v326_v6 = vadd.f32 %v325_v48, %v844_v57 }
  0xb1   :  { %v355_v9 = vadd.f32 %v354_v49, %v846_v58  ;;  %v561_v20 = vpop.eup %560 }
  0xb2   :  { %566 = vtanh.f32 %v326_v6  ;;  %v563_v22 = vpop.eup %562  ;;  %v394_v41 = vadd.f32 %v561_v20, %v555_v13 }
  0xb3   :  { %568 = vtanh.f32 %v355_v9  ;;  %v395_v44 = vadd.f32 %v563_v22, %v557_v15 }
  0xb4   :  { %v296_v51 = vpop.f32.mrf.mxu3 }
  0xb5   :  { %v297_v10 = vadd.f32 %v296_v51, %v848_v59  ;;  %v565_v26 = vpop.eup %564 }
  0xb7   :  { %v327_v52 = vpop.f32.mrf.mxu0  ;;  %570 = vtanh.f32 %v297_v10 }
  0xb8   :  { %v356_v53 = vpop.f32.mrf.mxu1  ;;  %v839_v54 = vpop.f32.mrf.mxu2  ;;  %v328_v12 = vadd.f32 %v327_v52, %v844_v57 }
  0xb9   :  { %v357_v14 = vadd.f32 %v356_v53, %v846_v58  ;;  %v567_v28 = vpop.eup %566  ;;  %v110_v53 = vperm.slane %v108_v42, 0 }
  0xba   :  { %572 = vtanh.f32 %v328_v12  ;;  %v569_v31 = vpop.eup %568  ;;  %v397_v49 = vadd.f32 %v567_v28, %v394_v41  ;;  %v175_v12 = vadd.f32 %v839_v54, %v111_v55 }
  0xbb   :  { %574 = vtanh.f32 %v357_v14 }
  0xbc   :  { %v298_v56 = vpop.f32.mrf.mxu3 }
  0xbd   :  { %v299_v16 = vadd.f32 %v298_v56, %v848_v59  ;;  %v571_v33 = vpop.eup %570 }
  0xbf   :  { %v330_v60 = vpop.f32.mrf.mxu0  ;;  %576 = vtanh.f32 %v299_v16 }
  0xc0   :  { %v359_v61 = vpop.f32.mrf.mxu1  ;;  %v176_v63 = vpop.f32.mrf.mxu2  ;;  %v331_v19 = vadd.f32 %v330_v60, %v844_v57  ;;  %v393_v60 = vadd.f32 %v565_v26, %v559_v18 }
  0xc1   :  { %v360_v21 = vadd.f32 %v359_v61, %v846_v58  ;;  %v573_v35 = vpop.eup %572  ;;  %v398_v61 = vadd.f32 %v569_v31, %v395_v44 }
  0xc2   :  { %578 = vtanh.f32 %v331_v19  ;;  %v575_v38 = vpop.eup %574  ;;  %v400_v62 = vadd.f32 %v573_v35, %v397_v49  ;;  %v396_v2 = vadd.f32 %v571_v33, %v393_v60 }
  0xc3   :  { %580 = vtanh.f32 %v360_v21 }
  0xc4   :  { %v301_v3 = vpop.f32.mrf.mxu3 }
  0xc5   :  { %v302_v23 = vadd.f32 %v301_v3, %v848_v59  ;;  %v577_v40 = vpop.eup %576  ;;  %v401_v3 = vadd.f32 %v575_v38, %v398_v61 }
  0xc7   :  { %v332_v7 = vpop.f32.mrf.mxu0  ;;  %582 = vtanh.f32 %v302_v23 }
  0xc8   :  { %v361_v8 = vpop.f32.mrf.mxu1  ;;  %v859_v11 = vpop.f32.mrf.mxu2  ;;  %v333_v27 = vadd.f32 %v332_v7, %v844_v57 }
  0xc9   :  { %v362_v29 = vadd.f32 %v361_v8, %v846_v58  ;;  %v579_v43 = vpop.eup %578  ;;  %v399_v8 = vadd.f32 %v577_v40, %v396_v2  ;;  %v188_v14 = vadd.f32 %v859_v11, %v112_v0 }
  0xca   :  { %584 = vtanh.f32 %v333_v27  ;;  %v581_v48 = vpop.eup %580  ;;  %v403_v4 = vadd.f32 %v579_v43, %v400_v62 }
  0xcb   :  { %586 = vtanh.f32 %v362_v29  ;;  %v404_v9 = vadd.f32 %v581_v48, %v401_v3 }
  0xcc   :  { %v303_v17 = vpop.f32.mrf.mxu3 }
  0xcd   :  { %v304_v32 = vadd.f32 %v303_v17, %v848_v59  ;;  %v583_v52 = vpop.eup %582 }
  0xce   :  { %v402_v16 = vadd.f32 %v583_v52, %v399_v8 }
  0xcf   :  { %v335_v24 = vpop.f32.mrf.mxu0  ;;  %588 = vtanh.f32 %v304_v32 }
  0xd0   :  { %v364_v25 = vpop.f32.mrf.mxu1  ;;  %v189_v30 = vpop.f32.mrf.mxu2  ;;  %v336_v34 = vadd.f32 %v335_v24, %v844_v57 }
  0xd1   :  { %v365_v36 = vadd.f32 %v364_v25, %v846_v58  ;;  %v585_v56 = vpop.eup %584 }
  0xd2   :  { %590 = vtanh.f32 %v336_v34  ;;  %v587_v63 = vpop.eup %586  ;;  %v406_v10 = vadd.f32 %v585_v56, %v403_v4 }
  0xd3   :  { %592 = vtanh.f32 %v365_v36  ;;  %v407_v17 = vadd.f32 %v587_v63, %v404_v9 }
  0xd4   :  { %v306_v37 = vpop.f32.mrf.mxu3 }
  0xd5   :  { %v307_v39 = vadd.f32 %v306_v37, %v848_v59  ;;  %v589_v1 = vpop.eup %588 }
  0xd7   :  { %v337_v45 = vpop.f32.mrf.mxu0  ;;  %594 = vtanh.f32 %v307_v39 }
  0xd8   :  { %v366_v47 = vpop.f32.mrf.mxu1  ;;  %v338_v50 = vadd.f32 %v337_v45, %v844_v57  ;;  %v591_v57 = vpop.eup %590 }
  0xd9   :  { %v367_v51 = vadd.f32 %v366_v47, %v846_v58  ;;  %v162_v58 = vadd.f32 %v837_v46, %v110_v53  ;;  %v593_v7 = vpop.eup %592  ;;  %v409_v18 = vadd.f32 %v591_v57, %v406_v10  ;;  %v405_v46 = vadd.f32 %v589_v1, %v402_v16 }
  0xda   :  { %596 = vtanh.f32 %v338_v50  ;;  %v410_v20 = vadd.f32 %v593_v7, %v407_v17 }
  0xdb   :  { %598 = vtanh.f32 %v367_v51 }
  0xdc   :  { %v308_v5 = vpop.f32.mrf.mxu3 }
  0xdd   :  { %v309_v6 = vadd.f32 %v308_v5, %v848_v59  ;;  %v595_v13 = vpop.eup %594 }
  0xde   :  { %v408_v21 = vadd.f32 %v595_v13, %v405_v46 }
  0xdf   :  { %600 = vtanh.f32 %v309_v6 }
  0xe0   :  { %v597_v15 = vpop.eup %596  ;;  %602 = vtanh.f32 %v162_v58 }
  0xe1   :  { %v599_v19 = vpop.eup %598  ;;  %604 = vtanh.f32 %v175_v12  ;;  %v412_v59 = vadd.f32 %v597_v15, %v409_v18 }
  0xe2   :  { %606 = vtanh.f32 %v188_v14  ;;  %v413_v22 = vadd.f32 %v599_v19, %v410_v20 }
  0xe3   :  { %v421_v24 = vmul.f32 0.125, %v412_v59 }
  0xe4   :  { %v422_v11 = vmul.f32 0.125, %v413_v22 }
  0xe5   :  { %v601_v23 = vpop.eup %600 }
  0xe6   :  { %v411_v54 = vadd.f32 %v601_v23, %v408_v21  ;;  %v603_v25 = vpop.eup %602 }
  0xe7   :  { %v605_v26 = vpop.eup %604 }
  0xe8   :  { %v420_v27 = vmul.f32 0.125, %v411_v54  ;;  %v607_v28 = vpop.eup %606  ;;  %v424_v29 = vmul.f32 %v605_v26, %v421_v24 }
  0xe9   :  { %v425_v31 = vmul.f32 %v607_v28, %v422_v11 }
  0xea   :  { %v423_v30 = vmul.f32 %v603_v25, %v420_v27 }
  0xec   :  { %v426_v32 = vadd.f32 %v424_v29, %v423_v30 }
  0xee   :  { %v427_v33 = vadd.f32 %v426_v32, %v425_v31 }
  0xf0   :  { %608 = vtanh.f32 %v427_v33 }
  0xf6   :  { %v609_v34 = vpop.eup %608 }
  0xf7   :  { %429 = vst [vmem:[#allocation12] sm:$0xff] %v609_v34 }
  0xf8   :  { %440 = dma.vmem_to_hbm [thread:$0]  %s436_s23, 128, %s438_s26, [#allocation5]  }
  0xf9   :  { %760 = dma.done.wait [#allocation5], 128  }
  0xfa   :  { %761 = vsyncadd [#allocation5], 4294967168 }
  0xfb   :  { %445 = vsyncpa [#allocation4], 1 }
  0xfc   :  { %446 = vsyncpa [#allocation7], 1 }
  0xfd   :  { %447 = vsyncpa [#allocation10], 1 }
  0xfe   :  { %448 = vsyncpa [#allocation5], 1 }

// kernel: tpu_custom_call.1
= control target key start
LH: loop header
LB: loop body
LE: loop exit
PB: predicated region body
PF: predicated region fallthrough
CT: control target
= control target key end

     0   :  { %11 = vsyncpa [#allocation4], 0  ;;  %s882_s0 = inlined_call_operand.hbm [shape: bf16[8,32], index: 0, kind: input, shape index: {}]   ;;  %s883_s1 = inlined_call_operand.hbm [shape: bf16[8,8,32], index: 1, kind: input, shape index: {}]   ;;  %s884_s2 = inlined_call_operand.hbm [shape: bf16[32,384], index: 2, kind: input, shape index: {}]   ;;  %s885_s3 = inlined_call_operand.hbm [shape: f32[1,384], index: 3, kind: input, shape index: {}]   ;;  %s886_s4 = inlined_call_operand.hbm [shape: bf16[32,384], index: 4, kind: input, shape index: {}]   ;;  %s887_s5 = inlined_call_operand.vmem [shape: f32[1,384], index: 5, kind: input, shape index: {}]   ;;  %s888_s6 = inlined_call_operand.hbm [shape: f32[8,128], index: 6, kind: output, shape index: {}]  }
   0x1   :  { %12 = vsyncpa [#allocation7], 0 }
   0x2   :  { %13 = vsyncpa [#allocation10], 0  ;;  %s30_s23 = sshll.u32 %s883_s1, 4  ;;  %s31_s23 = int_to_ptr.hbm [resolvable:$true] %s30_s23 }
   0x3   :  { %14 = vsyncpa [#allocation5], 0  ;;  %s762_s24 = smov [#allocation6]   ;;  %s57_s28 = sshll.u32 %s885_s3, 4  ;;  %s58_s28 = int_to_ptr.hbm [resolvable:$true] %s57_s28 }
   0x4   :  { %s32_s25 = sshll.u32 %s762_s24, 4  ;;  %s763_s29 = smov 64   ;;  %s33_s25 = int_to_ptr.vmem [resolvable:$true] %s32_s25 }
   0x5   :  { %s764_s30 = smov 4   ;;  %s765_s7 = smov [#allocation9]  }
   0x6   :  { %38 = dma.hbm_to_vmem [thread:$0]  %s31_s23, 512, %s33_s25, [#allocation7], %s763_s29, %s763_s29, %s764_s30  }
   0x7   :  { %s59_s8 = sshll.u32 %s765_s7, 4  ;;  %s20_s11 = sshll.u32 %s882_s0, 4  ;;  %s60_s8 = int_to_ptr.vmem [resolvable:$true] %s59_s8  ;;  %s21_s11 = int_to_ptr.hbm [resolvable:$true] %s20_s11 }
   0x8   :  { %62 = dma.hbm_to_vmem [thread:$0]  %s58_s28, 48, %s60_s8, [#allocation10]  }
   0x9   :  { %s43_s13 = sshll.u32 %s884_s2, 4  ;;  %s766_s14 = smov [#allocation3]   ;;  %s44_s13 = int_to_ptr.hbm [resolvable:$true] %s43_s13 }
   0xa   :  { %s22_s15 = sshll.u32 %s766_s14, 4  ;;  %s767_s3 = smov [#allocation8]   ;;  %s23_s15 = int_to_ptr.vmem [resolvable:$true] %s22_s15 }
   0xb   :  { %25 = dma.hbm_to_vmem [thread:$0]  %s21_s11, 64, %s23_s15, [#allocation4]  }
   0xc   :  { %s45_s16 = sshll.u32 %s767_s3, 4  ;;  %s768_s17 = smov 192   ;;  %s46_s16 = int_to_ptr.vmem [resolvable:$true] %s45_s16 }
   0xd   :  { %s769_s18 = smov 12   ;;  %s67_s20 = sshll.u32 %s886_s4, 4  ;;  %s68_s20 = int_to_ptr.hbm [resolvable:$true] %s67_s20 }
   0xe   :  { %51 = dma.hbm_to_vmem [thread:$0]  %s44_s13, 768, %s46_s16, [#allocation7], %s768_s17, %s768_s17, %s769_s18  }
   0xf   :  { %s770_s21 = smov [#allocation11]  }
  0x10   :  { %s69_s22 = sshll.u32 %s770_s21, 4  ;;  %s70_s22 = int_to_ptr.vmem [resolvable:$true] %s69_s22 }
  0x11   :  { %75 = dma.hbm_to_vmem [thread:$0]  %s68_s20, 768, %s70_s22, [#allocation10], %s768_s17, %s768_s17, %s769_s18  }
  0x12   :  { %754 = dma.done.wait [#allocation4], 64  }
  0x13   :  { %755 = vsyncadd [#allocation4], 4294967232 }
  0x14   :  { %756 = dma.done.wait [#allocation7], 1280  }
  0x15   :  { %757 = vsyncadd [#allocation7], 4294966016 }
  0x16   :  { %758 = dma.done.wait [#allocation10], 816  }
  0x17   :  { %759 = vsyncadd [#allocation10], 4294966480  ;;  %v506_v0 = vld [vmem:[#allocation11 + $0x18] sm:$0xf]  ;;  %v538_v1 = vld [vmem:[#allocation11 + $0x20] sm:$0xf0] }
  0x18   :  { %v537_v2 = vld [vmem:[#allocation11 + $0x1c] sm:$0xf]  ;;  %v507_v3 = vor.u32 %v538_v1, %v506_v0  ;;  %v508_v4 = vld [vmem:[#allocation11 + $0x24] sm:$0xf0]  ;;  %v514_v5 = vld [vmem:[#allocation11 + $0x20] sm:$0xf] }
  0x19   :  { %v539_v6 = vld [vmem:[#allocation11 + $0x28] sm:$0xf0]  ;;  %v511_v7 = vor.u32 %v537_v2, %v508_v4  ;;  %v494_v9 = vld [vmem:[#allocation11] sm:$0xf]  ;;  %v534_v11 = vld [vmem:[#allocation11 + $0x4] sm:$0xf] }
  0x1a   :  { %v515_v8 = vor.u32 %v539_v6, %v514_v5  ;;  %v535_v10 = vld [vmem:[#allocation11 + $0x8] sm:$0xf0]  ;;  %288 = vmatpush.bf16.msra.mxu3 %v507_v3  ;;  %v496_v13 = vld [vmem:[#allocation11 + $0xc] sm:$0xf0]  ;;  %v502_v14 = vld [vmem:[#allocation11 + $0x8] sm:$0xf] }
  0x1b   :  { %v495_v12 = vor.u32 %v535_v10, %v494_v9  ;;  %v536_v15 = vld [vmem:[#allocation11 + $0x10] sm:$0xf0]  ;;  %317 = vmatpush.bf16.msra.mxu0 %v511_v7  ;;  %v499_v16 = vor.u32 %v534_v11, %v496_v13  ;;  %v463_v18 = vld [vmem:[#allocation8 + $0x18] sm:$0xf]  ;;  %v532_v19 = vld [vmem:[#allocation8 + $0x20] sm:$0xf0] }
  0x1c   :  { %346 = vmatpush.bf16.msra.mxu1 %v515_v8  ;;  %v503_v17 = vor.u32 %v536_v15, %v502_v14  ;;  %v464_v20 = vor.u32 %v532_v19, %v463_v18  ;;  %v451_v21 = vld [vmem:[#allocation8] sm:$0xf]  ;;  %v529_v22 = vld [vmem:[#allocation8 + $0x8] sm:$0xf0]  ;;  %v531_v24 = vld [vmem:[#allocation8 + $0x1c] sm:$0xf] }
  0x1d   :  { %v540_v23 = vld [vmem:[#allocation6] sm:$0xff]  ;;  %v465_v25 = vld [vmem:[#allocation8 + $0x24] sm:$0xf0]  ;;  %vm148_vm0 = vcmask 261120   ;;  %v452_v26 = vor.u32 %v529_v22, %v451_v21  ;;  %v453_v29 = vld [vmem:[#allocation8 + $0xc] sm:$0xf0] }
  0x1e   :  { %289 = vmatpush.bf16.msra.mxu3 %v495_v12  ;;  %158 = vmatpush.bf16.msra.mxu2 %v464_v20  ;;  %v468_v27 = vor.u32 %v531_v24, %v465_v25  ;;  %v528_v28 = vld [vmem:[#allocation8 + $0x4] sm:$0xf]  ;;  %v471_v30 = vld [vmem:[#allocation8 + $0x20] sm:$0xf]  ;;  %v99_v31 = vld [vmem:[#allocation3] sm:$0xf] }
  0x1f   :  { %318 = vmatpush.bf16.msra.mxu0 %v499_v16  ;;  %v533_v32 = vld [vmem:[#allocation8 + $0x28] sm:$0xf0]  ;;  %v456_v33 = vor.u32 %v528_v28, %v453_v29  ;;  %v459_v36 = vld [vmem:[#allocation8 + $0x8] sm:$0xf]  ;;  %v530_v37 = vld [vmem:[#allocation8 + $0x10] sm:$0xf0] }
  0x20   :  { %347 = vmatpush.bf16.msra.mxu1 %v503_v17  ;;  %v472_v34 = vor.u32 %v533_v32, %v471_v30  ;;  %v541_v35 = vld [vmem:[#allocation6 + $0x8] sm:$0xff]  ;;  %v460_v38 = vor.u32 %v530_v37, %v459_v36  ;;  %v542_v39 = vld [vmem:[#allocation6 + $0x10] sm:$0xff]  ;;  %v543_v40 = vld [vmem:[#allocation6 + $0x18] sm:$0xff]  ;;  %s437_s26 = sshll.u32 %s888_s6, 4  ;;  %s438_s26 = int_to_ptr.hbm [resolvable:$true] %s437_s26 }
  0x21   :  { %516 = vmatmul.msk.bf16.vlgmr.msra.gmra.mxu3 %vm148_vm0, %v540_v23  ;;  %v202_v55 = vld [vmem:[%s887_s5] sm:$0x7]  ;;  %s771_s5 = smov [#allocation12]  }
  0x22   :  { %520 = vmatmul.msk.bf16.vlgmr.msra.gmra.mxu0 %vm148_vm0, %v540_v23  ;;  %159 = vmatpush.bf16.msra.mxu2 %v452_v26  ;;  %v844_v57 = vperm.slane %v202_v55, 1  ;;  %v846_v58 = vperm.slane %v202_v55, 2  ;;  %v848_v59 = vperm.slane %v202_v55, 0  ;;  %s435_s23 = sshll.u32 %s771_s5, 4  ;;  %s436_s23 = int_to_ptr.vmem [resolvable:$true] %s435_s23 }
  0x23   :  { %524 = vmatmul.msk.bf16.vlgmr.msra.gmra.mxu1 %vm148_vm0, %v540_v23 }
  0x25   :  { %473 = vmatmul.msk.bf16.vlgmr.msra.gmra.mxu2 %vm148_vm0, %v99_v31 }
  0x26   :  { %171 = vmatpush.bf16.msrb.mxu2 %v468_v27 }
  0x2a   :  { %172 = vmatpush.bf16.msrb.mxu2 %v456_v33 }
  0x2e   :  { %184 = vmatpush.bf16.msra.mxu2 %v472_v34 }
  0x31   :  { %517 = vmatmul.msk.bf16.gmra.mxu3 %vm148_vm0, %v541_v35 }
  0x32   :  { %521 = vmatmul.msk.bf16.gmra.mxu0 %vm148_vm0, %v541_v35  ;;  %185 = vmatpush.bf16.msra.mxu2 %v460_v38 }
  0x33   :  { %525 = vmatmul.msk.bf16.gmra.mxu1 %vm148_vm0, %v541_v35 }
  0x35   :  { %474 = vmatmul.msk.bf16.vlgmr.msrb.gmra.mxu2 %vm148_vm0, %v99_v31 }
  0x41   :  { %518 = vmatmul.msk.bf16.gmra.mxu3 %vm148_vm0, %v542_v39 }
  0x42   :  { %522 = vmatmul.msk.bf16.gmra.mxu0 %vm148_vm0, %v542_v39 }
  0x43   :  { %526 = vmatmul.msk.bf16.gmra.mxu1 %vm148_vm0, %v542_v39 }
  0x45   :  { %475 = vmatmul.msk.bf16.vlgmr.msra.gmra.mxu2 %vm148_vm0, %v99_v31 }
  0x51   :  { %519 = vmatmul.msk.bf16.gmra.mxu3 %vm148_vm0, %v543_v40 }
  0x52   :  { %523 = vmatmul.msk.bf16.gmra.mxu0 %vm148_vm0, %v543_v40 }
  0x53   :  { %527 = vmatmul.msk.bf16.gmra.mxu1 %vm148_vm0, %v543_v40 }
  0x9f   :  { %v320_v41 = vpop.f32.mrf.mxu0 }
  0xa0   :  { %v349_v42 = vpop.f32.mrf.mxu1  ;;  %v321_v62 = vadd.f32 %v320_v41, %v844_v57 }
  0xa1   :  { %v350_v0 = vadd.f32 %v349_v42, %v846_v58  ;;  %v108_v42 = vld [vmem:[#allocation9] sm:$0x7] }
  0xa2   :  { %554 = vtanh.f32 %v321_v62  ;;  %v111_v55 = vperm.slane %v108_v42, 1 }
  0xa3   :  { %556 = vtanh.f32 %v350_v0  ;;  %v112_v0 = vperm.slane %v108_v42, 2 }
  0xa4   :  { %v291_v43 = vpop.f32.mrf.mxu3 }
  0xa5   :  { %v292_v1 = vadd.f32 %v291_v43, %v848_v59 }
  0xa7   :  { %v322_v44 = vpop.f32.mrf.mxu0  ;;  %558 = vtanh.f32 %v292_v1 }
  0xa8   :  { %v351_v45 = vpop.f32.mrf.mxu1  ;;  %v837_v46 = vpop.f32.mrf.mxu2  ;;  %v323_v2 = vadd.f32 %v322_v44, %v844_v57 }
  0xa9   :  { %v352_v4 = vadd.f32 %v351_v45, %v846_v58  ;;  %v555_v13 = vpop.eup %554 }
  0xaa   :  { %560 = vtanh.f32 %v323_v2  ;;  %v557_v15 = vpop.eup %556 }
  0xab   :  { %562 = vtanh.f32 %v352_v4 }
  0xac   :  { %v293_v47 = vpop.f32.mrf.mxu3 }
  0xad   :  { %v294_v5 = vadd.f32 %v293_v47, %v848_v59  ;;  %v559_v18 = vpop.eup %558 }
  0xaf   :  { %v325_v48 = vpop.f32.mrf.mxu0  ;;  %564 = vtanh.f32 %v294_v5 }
  0xb0   :  { %v354_v49 = vpop.f32.mrf.mxu1  ;;  %v163_v50 = vpop.f32.mrf.mxu2  ;;  %v326_v6 = vadd.f32 %v325_v48, %v844_v57 }
  0xb1   :  { %v355_v9 = vadd.f32 %v354_v49, %v846_v58  ;;  %v561_v20 = vpop.eup %560 }
  0xb2   :  { %566 = vtanh.f32 %v326_v6  ;;  %v563_v22 = vpop.eup %562  ;;  %v394_v41 = vadd.f32 %v561_v20, %v555_v13 }
  0xb3   :  { %568 = vtanh.f32 %v355_v9  ;;  %v395_v44 = vadd.f32 %v563_v22, %v557_v15 }
  0xb4   :  { %v296_v51 = vpop.f32.mrf.mxu3 }
  0xb5   :  { %v297_v10 = vadd.f32 %v296_v51, %v848_v59  ;;  %v565_v26 = vpop.eup %564 }
  0xb7   :  { %v327_v52 = vpop.f32.mrf.mxu0  ;;  %570 = vtanh.f32 %v297_v10 }
  0xb8   :  { %v356_v53 = vpop.f32.mrf.mxu1  ;;  %v839_v54 = vpop.f32.mrf.mxu2  ;;  %v328_v12 = vadd.f32 %v327_v52, %v844_v57 }
  0xb9   :  { %v357_v14 = vadd.f32 %v356_v53, %v846_v58  ;;  %v567_v28 = vpop.eup %566  ;;  %v110_v53 = vperm.slane %v108_v42, 0 }
  0xba   :  { %572 = vtanh.f32 %v328_v12  ;;  %v569_v31 = vpop.eup %568  ;;  %v397_v49 = vadd.f32 %v567_v28, %v394_v41  ;;  %v175_v12 = vadd.f32 %v839_v54, %v111_v55 }
  0xbb   :  { %574 = vtanh.f32 %v357_v14 }
  0xbc   :  { %v298_v56 = vpop.f32.mrf.mxu3 }
  0xbd   :  { %v299_v16 = vadd.f32 %v298_v56, %v848_v59  ;;  %v571_v33 = vpop.eup %570 }
  0xbf   :  { %v330_v60 = vpop.f32.mrf.mxu0  ;;  %576 = vtanh.f32 %v299_v16 }
  0xc0   :  { %v359_v61 = vpop.f32.mrf.mxu1  ;;  %v176_v63 = vpop.f32.mrf.mxu2  ;;  %v331_v19 = vadd.f32 %v330_v60, %v844_v57  ;;  %v393_v60 = vadd.f32 %v565_v26, %v559_v18 }
  0xc1   :  { %v360_v21 = vadd.f32 %v359_v61, %v846_v58  ;;  %v573_v35 = vpop.eup %572  ;;  %v398_v61 = vadd.f32 %v569_v31, %v395_v44 }
  0xc2   :  { %578 = vtanh.f32 %v331_v19  ;;  %v575_v38 = vpop.eup %574  ;;  %v400_v62 = vadd.f32 %v573_v35, %v397_v49  ;;  %v396_v2 = vadd.f32 %v571_v33, %v393_v60 }
  0xc3   :  { %580 = vtanh.f32 %v360_v21 }
  0xc4   :  { %v301_v3 = vpop.f32.mrf.mxu3 }
  0xc5   :  { %v302_v23 = vadd.f32 %v301_v3, %v848_v59  ;;  %v577_v40 = vpop.eup %576  ;;  %v401_v3 = vadd.f32 %v575_v38, %v398_v61 }
  0xc7   :  { %v332_v7 = vpop.f32.mrf.mxu0  ;;  %582 = vtanh.f32 %v302_v23 }
  0xc8   :  { %v361_v8 = vpop.f32.mrf.mxu1  ;;  %v859_v11 = vpop.f32.mrf.mxu2  ;;  %v333_v27 = vadd.f32 %v332_v7, %v844_v57 }
  0xc9   :  { %v362_v29 = vadd.f32 %v361_v8, %v846_v58  ;;  %v579_v43 = vpop.eup %578  ;;  %v399_v8 = vadd.f32 %v577_v40, %v396_v2  ;;  %v188_v14 = vadd.f32 %v859_v11, %v112_v0 }
  0xca   :  { %584 = vtanh.f32 %v333_v27  ;;  %v581_v48 = vpop.eup %580  ;;  %v403_v4 = vadd.f32 %v579_v43, %v400_v62 }
  0xcb   :  { %586 = vtanh.f32 %v362_v29  ;;  %v404_v9 = vadd.f32 %v581_v48, %v401_v3 }
  0xcc   :  { %v303_v17 = vpop.f32.mrf.mxu3 }
  0xcd   :  { %v304_v32 = vadd.f32 %v303_v17, %v848_v59  ;;  %v583_v52 = vpop.eup %582 }
  0xce   :  { %v402_v16 = vadd.f32 %v583_v52, %v399_v8 }
  0xcf   :  { %v335_v24 = vpop.f32.mrf.mxu0  ;;  %588 = vtanh.f32 %v304_v32 }
  0xd0   :  { %v364_v25 = vpop.f32.mrf.mxu1  ;;  %v189_v30 = vpop.f32.mrf.mxu2  ;;  %v336_v34 = vadd.f32 %v335_v24, %v844_v57 }
  0xd1   :  { %v365_v36 = vadd.f32 %v364_v25, %v846_v58  ;;  %v585_v56 = vpop.eup %584 }
  0xd2   :  { %590 = vtanh.f32 %v336_v34  ;;  %v587_v63 = vpop.eup %586  ;;  %v406_v10 = vadd.f32 %v585_v56, %v403_v4 }
  0xd3   :  { %592 = vtanh.f32 %v365_v36  ;;  %v407_v17 = vadd.f32 %v587_v63, %v404_v9 }
  0xd4   :  { %v306_v37 = vpop.f32.mrf.mxu3 }
  0xd5   :  { %v307_v39 = vadd.f32 %v306_v37, %v848_v59  ;;  %v589_v1 = vpop.eup %588 }
  0xd7   :  { %v337_v45 = vpop.f32.mrf.mxu0  ;;  %594 = vtanh.f32 %v307_v39 }
  0xd8   :  { %v366_v47 = vpop.f32.mrf.mxu1  ;;  %v338_v50 = vadd.f32 %v337_v45, %v844_v57  ;;  %v591_v57 = vpop.eup %590 }
  0xd9   :  { %v367_v51 = vadd.f32 %v366_v47, %v846_v58  ;;  %v162_v58 = vadd.f32 %v837_v46, %v110_v53  ;;  %v593_v7 = vpop.eup %592  ;;  %v409_v18 = vadd.f32 %v591_v57, %v406_v10  ;;  %v405_v46 = vadd.f32 %v589_v1, %v402_v16 }
  0xda   :  { %596 = vtanh.f32 %v338_v50  ;;  %v410_v20 = vadd.f32 %v593_v7, %v407_v17 }
  0xdb   :  { %598 = vtanh.f32 %v367_v51 }
  0xdc   :  { %v308_v5 = vpop.f32.mrf.mxu3 }
  0xdd   :  { %v309_v6 = vadd.f32 %v308_v5, %v848_v59  ;;  %v595_v13 = vpop.eup %594 }
  0xde   :  { %v408_v21 = vadd.f32 %v595_v13, %v405_v46 }
  0xdf   :  { %600 = vtanh.f32 %v309_v6 }
  0xe0   :  { %v597_v15 = vpop.eup %596  ;;  %602 = vtanh.f32 %v162_v58 }
  0xe1   :  { %v599_v19 = vpop.eup %598  ;;  %604 = vtanh.f32 %v175_v12  ;;  %v412_v59 = vadd.f32 %v597_v15, %v409_v18 }
  0xe2   :  { %606 = vtanh.f32 %v188_v14  ;;  %v413_v22 = vadd.f32 %v599_v19, %v410_v20 }
  0xe3   :  { %v421_v24 = vmul.f32 0.125, %v412_v59 }
  0xe4   :  { %v422_v11 = vmul.f32 0.125, %v413_v22 }
  0xe5   :  { %v601_v23 = vpop.eup %600 }
  0xe6   :  { %v411_v54 = vadd.f32 %v601_v23, %v408_v21  ;;  %v603_v25 = vpop.eup %602 }
  0xe7   :  { %v605_v26 = vpop.eup %604 }
  0xe8   :  { %v420_v27 = vmul.f32 0.125, %v411_v54  ;;  %v607_v28 = vpop.eup %606  ;;  %v424_v29 = vmul.f32 %v605_v26, %v421_v24 }
  0xe9   :  { %v425_v31 = vmul.f32 %v607_v28, %v422_v11 }
  0xea   :  { %v423_v30 = vmul.f32 %v603_v25, %v420_v27 }
  0xec   :  { %v426_v32 = vadd.f32 %v424_v29, %v423_v30 }
  0xee   :  { %v427_v33 = vadd.f32 %v426_v32, %v425_v31 }
  0xf0   :  { %608 = vtanh.f32 %v427_v33 }
  0xf6   :  { %v609_v34 = vpop.eup %608 }
  0xf7   :  { %429 = vst [vmem:[#allocation12] sm:$0xff] %v609_v34 }
  0xf8   :  { %440 = dma.vmem_to_hbm [thread:$0]  %s436_s23, 128, %s438_s26, [#allocation5]  }
  0xf9   :  { %760 = dma.done.wait [#allocation5], 128  }
  0xfa   :  { %761 = vsyncadd [#allocation5], 4294967168 }
  0xfb   :  { %445 = vsyncpa [#allocation4], 1 }
  0xfc   :  { %446 = vsyncpa [#allocation7], 1 }
  0xfd   :  { %447 = vsyncpa [#allocation10], 1 }
  0xfe   :  { %448 = vsyncpa [#allocation5], 1 }

</bundles_post_ra>
